<compile_context>
chip_gen: v6e
topology: v6e:2x2x1
jax: 0.10.0
libtpu: 0.0.40
codegen_flags: <defaults>
</compile_context>

<pallas_src>
import functools
from dataclasses import dataclass
from typing import Optional

import jax
import jax.numpy as jnp
from jax.experimental import pallas as pl
from jax.experimental.pallas import tpu as pltpu


def upalign_value(x, to: int) -> int:
    """If `x` cannot evenly divide `to`, round it up to the next value that can."""
    assert x >= 0
    if x % to == 0:
        return x
    return x + to - x % to


@dataclass
class FilterProperties:
    window_size: int
    stride: int = 1
    dilation: int = 1
    causal: bool = False


@dataclass
class StreamingFeatureWrapperContext:
    """Streaming metadata: cached left frames for the next chunk."""
    left_context: Optional[jnp.ndarray] = None


# ---------------------------------------------------------------------------
# Fused Pallas kernel: in-VMEM im2col + MXU matmul + bias + ReLU -> bf16.
# ---------------------------------------------------------------------------
def _fused_conv_kernel(x_ref, w_ref, b_ref, o_ref, *, num_groups, f_tile):
    # x_ref: [1, 1, stride, f_tile + num_groups - 1] f32  (stride-de-interleaved
    #        waveform: x[s, i] = x_padded[i*stride + s], frame index on lanes)
    # w_ref: [window_k, n_pad] f32   (resident in VMEM, constant index_map)
    # b_ref: [1, n_pad]        f32   (resident)
    # o_ref: [1, f_tile, n_pad] bf16
    x = x_ref[0, 0]                                         # [stride, lf]
    # framesT[k, f] with k = g*stride + s equals x_padded[f*stride + k]
    #   = x[s, f + g]  -> G lane-shifted slices stacked along sublanes.
    frames_t = jnp.concatenate(
        [x[:, g:g + f_tile] for g in range(num_groups)], axis=0)  # [window_k, f_tile]
    acc = jax.lax.dot_general(                              # contract taps (dim 0)
        frames_t, w_ref[...],
        dimension_numbers=(((0,), (0,)), ((), ())),
        preferred_element_type=jnp.float32)                 # [f_tile, n_pad]
    o_ref[0] = jnp.maximum(acc + b_ref[...], 0.0).astype(o_ref.dtype)


def _fused_conv_feature_call(x_tiled, weight, bias, *, f_tile):
    """x_tiled [B, n_tiles, stride, f_tile+G-1] f32, weight [window_k, n_pad] f32,
    bias [1, n_pad] f32  ->  [B, n_tiles*f_tile, n_pad] bf16."""
    b, n_tiles, stride, lf = x_tiled.shape
    window_k, n_pad = weight.shape
    num_groups = window_k // stride
    kernel = functools.partial(_fused_conv_kernel,
                               num_groups=num_groups, f_tile=f_tile)
    return pl.pallas_call(
        kernel,
        out_shape=jax.ShapeDtypeStruct((b, n_tiles * f_tile, n_pad), jnp.bfloat16),
        grid_spec=pltpu.PrefetchScalarGridSpec(
            num_scalar_prefetch=0,
            grid=(b, n_tiles),
            in_specs=[
                # Waveform tile: last two block dims equal the full array dims.
                pl.BlockSpec((1, 1, stride, lf), lambda i, t: (i, t, 0, 0)),
                # Weight / bias: constant index_map -> stay resident in VMEM.
                pl.BlockSpec((window_k, n_pad), lambda i, t: (0, 0)),
                pl.BlockSpec((1, n_pad), lambda i, t: (0, 0)),
            ],
            out_specs=pl.BlockSpec((1, f_tile, n_pad), lambda i, t: (i, t, 0)),
        ),
        compiler_params=pltpu.CompilerParams(
            dimension_semantics=("parallel", "parallel"),
        ),
    )(x_tiled, weight, bias)


# ---------------------------------------------------------------------------
# The wrapped "module": same-padded strided conv1d + bias + ReLU (fused Pallas).
# ---------------------------------------------------------------------------
class PallasConvFeatureExtractor:
    """Feature extractor wrapped by StreamingFeatureWrapper.

    Behaves like a same-padded strided 1-D conv: input [B, T] -> output
    [B, ceil(T / stride), n_feats] (bf16), each output frame centered on its
    input position (window_size taps, bias, ReLU).
    """

    LANE = 128        # feature lane padding (kept lane-dense for stores)
    MAX_F_TILE = 2048 # frames per grid step (a few MiB of VMEM incl. acc/out)

    def __init__(self, window_size, stride, n_feats, key):
        self.window_size = window_size
        self.stride = stride
        self.n_feats = n_feats
        # Taps padded only to a multiple of stride (padded rows are zero);
        # features padded to the 128-lane width (trimmed after the kernel).
        self.window_k = upalign_value(window_size, stride)
        self.num_groups = self.window_k // stride
        self.n_pad = upalign_value(n_feats, self.LANE)

        kw, kb = jax.random.split(key)
        w = jax.random.normal(kw, (window_size, n_feats), jnp.float32)
        w = w / jnp.sqrt(jnp.float32(window_size))
        b = 0.1 * jax.random.normal(kb, (n_feats,), jnp.float32)

        w_p = jnp.zeros((self.window_k, self.n_pad), jnp.float32)
        self.weight = w_p.at[:window_size, :n_feats].set(w)
        b_p = jnp.zeros((1, self.n_pad), jnp.float32)
        self.bias = b_p.at[0, :n_feats].set(b)

        self._jit_forward = jax.jit(self._forward)

    # ---- static (trace-time) tiling plan ----------------------------------
    def _plan(self, batch, time):
        out_frames = -(-time // self.stride)
        # Ensure >= 2 grid steps when batch == 1 so both v7x TCs get work.
        min_steps = 1 if batch >= 2 else 2
        n_tiles = max(min_steps, -(-out_frames // self.MAX_F_TILE))
        f_tile = upalign_value(-(-out_frames // n_tiles), 8)
        n_tiles = max(min_steps, -(-out_frames // f_tile))
        return out_frames, f_tile, n_tiles

    # ---- fused forward (jitted) --------------------------------------------
    def _forward(self, chunk):
        batch, time = chunk.shape
        stride = self.stride
        g = self.num_groups
        out_frames, f_tile, n_tiles = self._plan(batch, time)

        left_pad = (self.window_size - 1) // 2
        needed = (n_tiles * f_tile + g - 1) * stride
        right_pad = max(0, needed - left_pad - time)
        xp = jnp.pad(chunk, ((0, 0), (left_pad, right_pad)))[:, :needed]

        # De-interleave by stride so the frame index lies on the lane axis:
        #   x_t[b, s, i] = xp[b, i*stride + s]
        x_t = xp.reshape(batch, needed // stride, stride).transpose(0, 2, 1)

        # Overlapping frame tiles (halo of g-1 samples); plain slices, no gather.
        lf = f_tile + g - 1
        tiles = [x_t[:, :, t * f_tile: t * f_tile + lf] for t in range(n_tiles)]
        x_tiled = jnp.stack(tiles, axis=1)          # [B, n_tiles, stride, lf]

        out = _fused_conv_feature_call(x_tiled, self.weight, self.bias,
                                       f_tile=f_tile)
        # Single slice: drop frame padding and feature lane padding.
        return out[:, :out_frames, :self.n_feats]

    def __call__(self, chunk):
        return self._jit_forward(chunk)

    # ---- pure-JAX reference (f32 math, bf16 output rounding) ---------------
    def reference(self, chunk):
        batch, time = chunk.shape
        out_frames = -(-time // self.stride)
        left_pad = (self.window_size - 1) // 2
        needed = (out_frames - 1) * self.stride + self.window_k
        right_pad = max(0, needed - left_pad - time)
        xp = jnp.pad(chunk, ((0, 0), (left_pad, right_pad)))
        idx = (jnp.arange(out_frames)[:, None] * self.stride
               + jnp.arange(self.window_k)[None, :])
        frames = xp[:, idx]                                   # [B, F, window_k]
        out = jnp.maximum(frames @ self.weight + self.bias, 0.0)
        return out[..., : self.n_feats]


# ---------------------------------------------------------------------------
# StreamingFeatureWrapper: identical bookkeeping to the PyTorch module.
# ---------------------------------------------------------------------------
class StreamingFeatureWrapper:
    def __init__(self, module, properties: FilterProperties):
        self.module = module
        self.properties = properties
        if self.properties.causal:
            raise ValueError(
                "Causal streaming feature wrapper is not yet supported")
        if self.properties.dilation != 1:
            raise ValueError(
                "Dilation not yet supported in streaming feature wrapper")

    def get_required_padding(self) -> int:
        return upalign_value((self.properties.window_size - 1) // 2,
                             self.properties.stride)

    def get_output_count_per_pad_frame(self) -> int:
        return self.get_required_padding() // self.properties.stride

    def get_recommended_final_chunk_count(self, frames_per_chunk: int) -> int:
        return (upalign_value(self.get_required_padding(), frames_per_chunk)
                // frames_per_chunk)

    def forward(self, chunk, context: StreamingFeatureWrapperContext):
        feat_pad_size = self.get_required_padding()
        num_outputs_per_pad = self.get_output_count_per_pad_frame()
        if context.left_context is None:
            # First chunk: zero-pad the past.
            chunk = jnp.pad(chunk, ((0, 0), (feat_pad_size * 2, 0)))
        else:
            # TODO(synk): the [cache | chunk] stitch could also be fused into
            # the kernel (two DMAs into one VMEM slab) to save one small HBM
            # round trip per streaming step.
            chunk = jnp.concatenate((context.left_context, chunk), axis=1)
        context.left_context = chunk[:, -feat_pad_size * 2:]
        feats = self.module(chunk)
        feats = feats[:, num_outputs_per_pad:-num_outputs_per_pad, ...]
        return feats

    __call__ = forward

    def get_filter_properties(self) -> FilterProperties:
        return self.properties

    def make_streaming_context(self) -> StreamingFeatureWrapperContext:
        return StreamingFeatureWrapperContext(None)


if __name__ == "__main__":
    key = jax.random.PRNGKey(0)
    k_mod, k_chunk1, k_chunk2 = jax.random.split(key, 3)

    # Small, deterministic example shapes.
    window_size = 32
    stride = 4
    n_feats = 16
    batch = 2
    chunk_time = 64

    props = FilterProperties(window_size=window_size, stride=stride)
    module = PallasConvFeatureExtractor(window_size, stride, n_feats, k_mod)
    wrapper = StreamingFeatureWrapper(module, props)
    ctx = wrapper.make_streaming_context()

    chunk1 = jax.random.normal(k_chunk1, (batch, chunk_time), jnp.float32)
    chunk2 = jax.random.normal(k_chunk2, (batch, chunk_time), jnp.float32)

    # Two streaming steps: first exercises the zero-pad path, second the
    # cached-left-context path.
    feats1 = wrapper.forward(chunk1, ctx)
    feats2 = wrapper.forward(chunk2, ctx)
    jax.block_until_ready((feats1, feats2))

    expected_frames = chunk_time // stride
    assert feats1.shape == (batch, expected_frames, n_feats), feats1.shape
    assert feats2.shape == (batch, expected_frames, n_feats), feats2.shape

    # Correctness check of the fused Pallas module vs a pure-JAX reference.
    test_in = jnp.pad(chunk1, ((0, 0), (wrapper.get_required_padding() * 2, 0)))
    out_kernel = module(test_in).astype(jnp.float32)
    out_ref = module.reference(test_in)
    jax.block_until_ready((out_kernel, out_ref))
    assert out_kernel.shape == out_ref.shape, (out_kernel.shape, out_ref.shape)
    # Kernel emits bf16 features; tolerance covers the bf16 output rounding.
    assert jnp.allclose(out_kernel, out_ref, rtol=2e-2, atol=2e-2), \
        "Pallas output mismatch vs reference"

    print("KERNEL_OK")
</pallas_src>

<mosaic_0001>
module attributes {stable_mosaic.version = 11 : i64} {
  func.func @_fused_conv_kernel(%arg0: i32, %arg1: i32, %arg2: memref<1x1x4x31xf32, #tpu.memory_space<vmem>>, %arg3: memref<32x128xf32, #tpu.memory_space<vmem>>, %arg4: memref<1x128xf32, #tpu.memory_space<vmem>>, %arg5: memref<1x24x128xbf16, #tpu.memory_space<vmem>>) attributes {dimension_semantics = [#tpu.dimension_semantics<parallel>, #tpu.dimension_semantics<parallel>], iteration_bounds = array<i64: 2, 1>, scalar_prefetch = 0 : i64, scratch_operands = 0 : i64, tpu.core_type = #tpu.core_type<tc>, window_params = [{transform_indices = @transform_0, window_bounds = array<i64: 1, 1, 4, 31>}, {pipeline_mode = #tpu.pipeline_mode<synchronous>, transform_indices = @transform_1, window_bounds = array<i64: 32, 128>}, {pipeline_mode = #tpu.pipeline_mode<synchronous>, transform_indices = @transform_2, window_bounds = array<i64: 1, 128>}, {transform_indices = @transform_3, window_bounds = array<i64: 1, 24, 128>}]} {
    %c0 = arith.constant 0 : index
    %c0_0 = arith.constant 0 : index
    %c0_1 = arith.constant 0 : index
    %c0_2 = arith.constant 0 : index
    %0 = vector.load %arg2[%c0, %c0_0, %c0_1, %c0_2] : memref<1x1x4x31xf32, #tpu.memory_space<vmem>>, vector<1x1x4x31xf32>
    %1 = vector.shape_cast %0 : vector<1x1x4x31xf32> to vector<4x31xf32>
    %2 = vector.extract_strided_slice %1 {offsets = [0, 0], sizes = [4, 24], strides = [1, 1]} : vector<4x31xf32> to vector<4x24xf32>
    %3 = vector.extract_strided_slice %1 {offsets = [0, 1], sizes = [4, 24], strides = [1, 1]} : vector<4x31xf32> to vector<4x24xf32>
    %4 = vector.extract_strided_slice %1 {offsets = [0, 2], sizes = [4, 24], strides = [1, 1]} : vector<4x31xf32> to vector<4x24xf32>
    %5 = vector.extract_strided_slice %1 {offsets = [0, 3], sizes = [4, 24], strides = [1, 1]} : vector<4x31xf32> to vector<4x24xf32>
    %6 = vector.extract_strided_slice %1 {offsets = [0, 4], sizes = [4, 24], strides = [1, 1]} : vector<4x31xf32> to vector<4x24xf32>
    %7 = vector.extract_strided_slice %1 {offsets = [0, 5], sizes = [4, 24], strides = [1, 1]} : vector<4x31xf32> to vector<4x24xf32>
    %8 = vector.extract_strided_slice %1 {offsets = [0, 6], sizes = [4, 24], strides = [1, 1]} : vector<4x31xf32> to vector<4x24xf32>
    %9 = vector.extract_strided_slice %1 {offsets = [0, 7], sizes = [4, 24], strides = [1, 1]} : vector<4x31xf32> to vector<4x24xf32>
    %10 = tpu.concatenate %2, %3, %4, %5, %6, %7, %8, %9 in 0 : vector<4x24xf32>, vector<4x24xf32>, vector<4x24xf32>, vector<4x24xf32>, vector<4x24xf32>, vector<4x24xf32>, vector<4x24xf32>, vector<4x24xf32> -> vector<32x24xf32>
    %c0_3 = arith.constant 0 : index
    %c0_4 = arith.constant 0 : index
    %11 = vector.load %arg3[%c0_3, %c0_4] : memref<32x128xf32, #tpu.memory_space<vmem>>, vector<32x128xf32>
    %cst = arith.constant dense<0.000000e+00> : vector<24x128xf32>
    %12 = tpu.matmul %10, %11, %cst {dimension_numbers = #tpu.dot_dimension_numbers<[0], [0], [1], [1], [0, 1, 1, 1], [], []>} : vector<32x24xf32>, vector<32x128xf32>, vector<24x128xf32> -> vector<24x128xf32>
    %c0_5 = arith.constant 0 : index
    %c0_6 = arith.constant 0 : index
    %13 = vector.load %arg4[%c0_5, %c0_6] : memref<1x128xf32, #tpu.memory_space<vmem>>, vector<1x128xf32>
    %14 = vector.broadcast %13 : vector<1x128xf32> to vector<24x128xf32>
    %15 = arith.addf %12, %14 : vector<24x128xf32>
    %cst_7 = arith.constant 0.000000e+00 : f32
    %16 = vector.broadcast %cst_7 : f32 to vector<24x128xf32>
    %17 = arith.maximumf %15, %16 : vector<24x128xf32>
    %18 = arith.truncf %17 : vector<24x128xf32> to vector<24x128xbf16>
    %c0_8 = arith.constant 0 : index
    %c0_9 = arith.constant 0 : index
    %c0_10 = arith.constant 0 : index
    %19 = vector.load %arg5[%c0_8, %c0_9, %c0_10] : memref<1x24x128xbf16, #tpu.memory_space<vmem>>, vector<1x24x128xbf16>
    %20 = vector.shape_cast %19 : vector<1x24x128xbf16> to vector<24x128xbf16>
    %21 = vector.shape_cast %18 : vector<24x128xbf16> to vector<1x24x128xbf16>
    tpu.vector_store %arg5[%c0_8, %c0_9, %c0_10], %21 {strides = array<i32>} : memref<1x24x128xbf16, #tpu.memory_space<vmem>>, vector<1x24x128xbf16>,
    return
  }
  func.func @transform_0(%arg0: i32, %arg1: i32) -> (i32, i32, i32, i32) {
    %c0_i32 = arith.constant 0 : i32
    %c0_i32_0 = arith.constant 0 : i32
    %c0_i32_1 = arith.constant 0 : i32
    return %arg0, %arg1, %c0_i32, %c0_i32_0 : i32, i32, i32, i32
  }
  func.func @transform_1(%arg0: i32, %arg1: i32) -> (i32, i32) {
    %c0_i32 = arith.constant 0 : i32
    %c0_i32_0 = arith.constant 0 : i32
    %c0_i32_1 = arith.constant 0 : i32
    return %c0_i32, %c0_i32_0 : i32, i32
  }
  func.func @transform_2(%arg0: i32, %arg1: i32) -> (i32, i32) {
    %c0_i32 = arith.constant 0 : i32
    %c0_i32_0 = arith.constant 0 : i32
    %c0_i32_1 = arith.constant 0 : i32
    return %c0_i32, %c0_i32_0 : i32, i32
  }
  func.func @transform_3(%arg0: i32, %arg1: i32) -> (i32, i32, i32) {
    %c0_i32 = arith.constant 0 : i32
    %c0_i32_0 = arith.constant 0 : i32
    return %arg0, %arg1, %c0_i32 : i32, i32, i32
  }
}

</mosaic_0001>

<bundles_post_ra>
// kernel: _forward.1
= control target key start
LH: loop header
LB: loop body
LE: loop exit
PB: predicated region body
PF: predicated region fallthrough
CT: control target
= control target key end

     0   :  { %s610_s12 = smov 0   ;;  %s612_s13 = smov 0   ;;  %s665_s0 = inlined_call_operand.vmem [shape: f32[2,1,4,31], index: 0, kind: input, shape index: {}]   ;;  %s666_s1 = inlined_call_operand.vmem [shape: f32[32,128], index: 1, kind: input, shape index: {}]   ;;  %s667_s2 = inlined_call_operand.vmem [shape: f32[1,128], index: 2, kind: input, shape index: {}]   ;;  %s668_s3 = inlined_call_operand.vmem [shape: bf16[2,24,128], index: 3, kind: output, shape index: {}]  }
   0x1   :  { %s614_s14 = smov 0  }
   0x2 LB: > { %s25_s15 = sadd.s32 1, %s575_s13  ;;  %p471_p0 = scmp.ge.s32.totalorder %s579_s14, 1  ;;  %s579_s14 = sphi %s614_s14, %s13_s14   ;;  %s575_s13 = sphi %s612_s13, %s670_s13   ;;  %s571_s12 = sphi %s610_s12, %s669_s12  }
   0x3   : > { %p27_p1 = scmp.ge.s32.totalorder %s25_s15, 2  ;;  %p155_p2 = scmp.lt.s32.totalorder %s579_s14, 3 }
   0x5   : > { %s672_s15 = smov (%p27_p1, %s25_s15), 0  ;;  %p156_p3 = pnand %p471_p0, %p155_p2 }
   0x6   : > { %p185_p4 = scmp.lt.s32.totalorder (!%p156_p3), %s571_s12, 1  ;;  %s581_s20 = smov (!%p156_p3), 124  }
   0x7   : > { %159 = sbr.rel (%p156_p3) target bundleno = 469 (0x1d5), region = 32  ;;  %s582_s21 = smov (!%p156_p3), 126  }
   0x8   : > { %s583_s22 = smov (!%p156_p3), 125   ;;  %s584_s23 = smov (!%p156_p3), 127  }
   0x9   : > { %s586_s28 = smov (!%p156_p3), 123   ;;  %s587_s29 = smov (!%p156_p3), 122  }
   0xa   : > { %s589_s7 = smov (!%p156_p3), 121  }
   0xc   : > { %s674_s12 = smov (!%p185_p4, %s571_s12), 1  ;;  %v234_v2 = vld [vmem:[%s666_s1 + $0x18] sm:$0xff]  ;;  %v585_v3 = vmov 0.0   ;;  %v233_v4 = vld [vmem:[%s666_s1 + $0x10] sm:$0xff]  ;;  %v232_v5 = vld [vmem:[%s666_s1 + $0x8] sm:$0xff]  ;;  %vm588_vm0 = vmmov 0  }
   0xd   : > { %s472_s16 = sshll.u32 %s674_s12, 2  ;;  %498 = vmatprep.subr.mxu0 %v585_v3  ;;  %515 = vmatprep.subr.mxu1 %v585_v3  ;;  %v231_v6 = vld [vmem:[%s666_s1] sm:$0xff]  ;;  %vm226_vm1 = vcmask 1043456   ;;  %vm274_vm2 = vcmask 261120   ;;  %s523_s10 = smul.u32 12, %s674_s12 }
   0xe   : > { %s191_s19 = scalar_lea.vmem %s665_s0, %s472_s16  ;;  %499 = vmatpush3.msra.mxu0 %v234_v2  ;;  %519 = vmatpush3.msra.mxu1 %v234_v2  ;;  %v474_v21 = vld [vmem:[%s667_s2] ss:$0 sm:$0xff] }
   0xf   : > { %v202_v0 = vld [vmem:[%s191_s19] sm:$0xf]  ;;  %500 = vmatprep.subr.mxu0 %v585_v3  ;;  %516 = vmatprep.subr.mxu1 %v585_v3  ;;  %s200_s17 = scalar_lea.vmem %s668_s3, %s523_s10 }
  0x10   : > { %214 = vrot.lane.b32.xlu1 %v202_v0, %s581_s20  ;;  %208 = vrot.lane.b32.xlu0 %v202_v0, %s582_s21  ;;  %v204_v1 = vrot.slane %v202_v0, 4 }
  0x11   : > { %501 = vmatpush3.msra.mxu0 %v233_v4  ;;  %520 = vmatpush3.msra.mxu1 %v233_v4 }
  0x12   : > { %502 = vmatprep.subr.mxu0 %v585_v3  ;;  %506 = vmatprep.mubr.msk.f32.mxu0 %vm588_vm0, %v585_v3 }
  0x13   : > { %503 = vmatpush3.msra.mxu0 %v232_v5  ;;  %517 = vmatprep.subr.mxu1 %v585_v3 }
  0x14   : > { %211 = vrot.lane.b32.xlu1 %v204_v1, %s583_s22  ;;  %205 = vrot.lane.b32.xlu0 %v204_v1, %s584_s23 }
  0x15   : > { %504 = vmatprep.subr.mxu0 %v585_v3  ;;  %521 = vmatpush3.msra.mxu1 %v232_v5 }
  0x16   : > { %505 = vmatpush3.msra.mxu0 %v231_v6  ;;  %518 = vmatprep.subr.mxu1 %v585_v3 }
  0x17   : > { %509 = vmatprep.mubr.msk.f32.mxu1 %vm588_vm0, %v585_v3  ;;  %522 = vmatpush3.msra.mxu1 %v231_v6 }
  0x18   : > { %217 = vrot.lane.b32.xlu0 %v204_v1, %s586_s28  ;;  %220 = vrot.lane.b32.xlu1 %v202_v0, %s587_s29 }
  0x1c   : > { %223 = vrot.lane.b32.xlu0 %v204_v1, %s589_s7 }
  0x82   : > { %v215_v7 = vpop.permute.xlu1 %214  ;;  %v209_v8 = vpop.permute.xlu0 %208 }
  0x86   : > { %v206_v9 = vpop.permute.xlu0 %205  ;;  %v212_v11 = vpop.permute.xlu1 %211 }
  0x87   : > { %v227_v10 = vsel %vm226_vm1, %v202_v0, %v206_v9  ;;  %v228_v13 = vsel %vm226_vm1, %v209_v8, %v212_v11 }
  0x88   : > { %242 = vxpose.xlu1.b32.start [1/4] (short) (narrow) %v227_v10, 24 }
  0x8a   : > { %v218_v12 = vpop.permute.xlu0 %217  ;;  %v221_v14 = vpop.permute.xlu1 %220 }
  0x8b   : > { %v229_v16 = vsel %vm226_vm1, %v215_v7, %v218_v12 }
  0x8c   : > { %243 = vxpose.xlu1.b32.cont [2/4] (short) (narrow) %v228_v13, 24 }
  0x8e   : > { %v224_v15 = vpop.permute.xlu0 %223 }
  0x8f   : > { %v230_v17 = vsel %vm226_vm1, %v221_v14, %v224_v15 }
  0x90   : > { %244 = vxpose.xlu1.b32.cont [3/4] (short) (narrow) %v229_v16, 24 }
  0x94   : > { %245 = vxpose.xlu1.b32.end [4/4] (short) (narrow) %v230_v17, 24 }
 0x104   : > { %v258_v18 = vpop.trf.xlu1 }
 0x105   : > { %507 = vmatmul.mubr.msk.f32.vlgmr.msra.gmra.mxu0 %vm274_vm2, %v258_v18 }
 0x108   : > { %v259_v19 = vpop.trf.xlu1 }
 0x109   : > { %510 = vmatmul.mubr.msk.f32.vlgmr.msra.gmra.mxu1 %vm274_vm2, %v259_v19 }
 0x10a   : > { %512 = vmatprep.mubr.msk.f32.mxu1 %vm588_vm0, %v585_v3 }
 0x10c   : > { %v260_v20 = vpop.trf.xlu1 }
 0x10d   : > { %513 = vmatmul.mubr.msk.f32.gmra.mxu1 %vm274_vm2, %v260_v20 }
 0x1c5   : > { %v350_v22 = vpop.f32.mrf.mxu0 }
 0x1c6   : > { %v351_v24 = vadd.f32 %v474_v21, %v350_v22 }
 0x1c7   : > { %v508_v23 = vpop.f32.mrf.mxu0 }
 0x1c8   : > { %v364_v28 = vmax.f32 %v351_v24, 0.0 }
 0x1c9   : > { %v355_v25 = vpop.f32.mrf.mxu1 }
 0x1ca   : > { %v356_v26 = vadd.f32 %v474_v21, %v355_v25 }
 0x1cb   : > { %v511_v27 = vpop.f32.mrf.mxu1 }
 0x1cc   : > { %v365_v29 = vmax.f32 %v356_v26, 0.0 }
 0x1cd   : > { %v360_v30 = vpop.f32.mrf.mxu1 }
 0x1ce   : > { %v489_v31 = vpack.c.bf16 %v365_v29, %v364_v28  ;;  %v361_v32 = vadd.f32 %v474_v21, %v360_v30 }
 0x1cf   : > { %v514_v33 = vpop.f32.mrf.mxu1 }
 0x1d0   : > { %v366_v34 = vmax.f32 %v361_v32, 0.0  ;;  %490 = vst [vmem:[%s200_s17] sm:$0xff] %v489_v31  }
 0x1d2   : > { %v485_v35 = vpack.c.bf16 %v366_v34, %v366_v34 }
 0x1d4   : > { %382 = vst [vmem:[%s200_s17 + $0x8] sm:$0xf] %v485_v35 }
 0x1d5 PF: > { %s13_s14 = sadd.s32 1, %s579_s14   ;;  %s669_s12 = smov %s575_s13 }
 0x1d6   : > { %p10_p5 = scmp.ge.s32.totalorder %s13_s14, 4   ;;  %s670_s13 = smov %s672_s15 }
 0x1d8   :  { %12 = sbr.rel (!%p10_p5) target bundleno = 2 (0x2), region = 62 }

</bundles_post_ra>
